<compile_context>
chip_gen: v7x
topology: tpu7x:2x2x1
jax: 0.10.0
libtpu: 0.0.40
codegen_flags: <defaults>
</compile_context>

<pallas_src>
import functools

import jax
import jax.numpy as jnp
from jax.experimental import pallas as pl
from jax.experimental.pallas import tpu as pltpu

EPS = 1e-5
LANE = 128
SUBLANE = 8
NODE_CHUNK = 1024          # rows of the table processed per inner-loop step


def _round_up(x, m):
    return ((x + m - 1) // m) * m


def _vmem_capacity_bytes():
    """Generation-aware VMEM capacity (128 MiB v5e/v6e, 64 MiB per-TC v7x)."""
    try:
        info = pltpu.get_tpu_info()
        cap = getattr(info, "vmem_capacity_bytes", None)
        if cap:
            return int(cap)
    except Exception:
        pass
    return 64 << 20        # conservative fallback (v7x per-TC)


def _pad_table(w, node_chunk=NODE_CHUNK):
    """Pad dim to a multiple of 128 and rows to a multiple of 8 / node_chunk."""
    n, d = w.shape
    d_pad = _round_up(d, LANE)
    n_pad = _round_up(n, SUBLANE) if n <= node_chunk else _round_up(n, node_chunk)
    if (n_pad, d_pad) == (n, d):
        return w
    return jnp.pad(w, ((0, n_pad - n), (0, d_pad - d)))


# ---------------------------------------------------------------------------
# Kernel 1: Poincare-ball normalization of the (padded) table (init-time).
# ---------------------------------------------------------------------------
def normalize_kernel(w_ref, o_ref):
    w = w_ref[...]                                            # (tile, dim_pad)
    norm = jnp.sqrt(jnp.sum(w * w, axis=-1, keepdims=True))   # (tile, 1)
    max_norm = 1.0 - EPS
    scale = jnp.where(norm > max_norm, max_norm / (norm + EPS),
                      jnp.ones_like(norm))
    o_ref[...] = w * scale


def _norm_row_tile(num_nodes, dim, vmem_cap):
    # in + out, double-buffered, f32  ->  4 * tile * dim * 4B must fit budget.
    budget = min(16 << 20, vmem_cap // 4)
    r = budget // (4 * dim * 4)
    r = max(8, (r // 8) * 8)
    return num_nodes if num_nodes <= r else r


def _norm_vmem_limit(tile, dim, vmem_cap):
    needed = 4 * tile * dim * 4
    limit = int(needed * 1.25) + (1 << 20)
    limit = max(limit, min(16 << 20, int(0.9 * vmem_cap)))
    return min(limit, int(0.9 * vmem_cap))


@functools.partial(jax.jit, donate_argnums=(0,))
def poincare_normalize(weight):
    num_nodes, dim = weight.shape
    vmem_cap = _vmem_capacity_bytes()
    tile = _norm_row_tile(num_nodes, dim, vmem_cap)
    return pl.pallas_call(
        normalize_kernel,
        out_shape=jax.ShapeDtypeStruct((num_nodes, dim), weight.dtype),
        grid_spec=pltpu.PrefetchScalarGridSpec(
            num_scalar_prefetch=0,
            grid=(pl.cdiv(num_nodes, tile),),
            in_specs=[pl.BlockSpec((tile, dim), lambda i: (i, 0))],
            out_specs=pl.BlockSpec((tile, dim), lambda i: (i, 0)),
        ),
        compiler_params=pltpu.CompilerParams(
            dimension_semantics=("parallel",),
            vmem_limit_bytes=_norm_vmem_limit(tile, dim, vmem_cap)),
        input_output_aliases={0: 0},     # in-place: no second full-size table
    )(weight)


# ---------------------------------------------------------------------------
# Kernel 2a: VMEM-resident gather. One grid step gathers T rows via one-hot
# matmuls over node CHUNKS, accumulating into the f32 output block in VMEM.
# ---------------------------------------------------------------------------
def _resident_gather_kernel(idx_ref, table_ref, o_ref, *, chunk):
    idx = idx_ref[...]                                    # (T, 1) int32
    t = o_ref.shape[0]
    n_chunks = table_ref.shape[0] // chunk

    o_ref[...] = jnp.zeros(o_ref.shape, o_ref.dtype)

    def body(c, carry):
        base = pl.multiple_of(c * chunk, chunk)
        rows = table_ref[pl.ds(base, chunk), :]           # (chunk, dim_pad)
        ids = base + jax.lax.broadcasted_iota(jnp.int32, (t, chunk), 1)
        one_hot = (idx == ids).astype(rows.dtype)         # (T, chunk) <= ~1 MiB
        o_ref[...] += jnp.dot(one_hot, rows, preferred_element_type=jnp.float32)
        return carry

    jax.lax.fori_loop(0, n_chunks, body, 0)


def _resident_vmem_limit(table_bytes, t, chunk, dim_pad, vmem_cap):
    est = (2 * table_bytes            # worst case: table double-buffered
           + 2 * t * dim_pad * 4      # output blocks (double-buffered)
           + 2 * t * LANE * 4         # lane-padded index blocks
           + 2 * t * chunk * 4        # one-hot + MXU staging
           + 2 * t * dim_pad * 4)     # accumulator / dot result
    est = int(est * 1.25) + (1 << 20)
    est = max(est, min(32 << 20, int(0.9 * vmem_cap)))
    return min(est, int(0.9 * vmem_cap))


def _forward_resident(table_pad, flat_idx, *, node_chunk, vmem_cap):
    num_nodes_pad, dim_pad = table_pad.shape
    chunk = min(node_chunk, num_nodes_pad) if node_chunk else min(NODE_CHUNK,
                                                                  num_nodes_pad)
    assert num_nodes_pad % chunk == 0, "padded table rows must divide by chunk"

    n = flat_idx.shape[0]
    t = min(256, _round_up(n, SUBLANE))       # indices gathered per grid step
    n_pad = _round_up(n, t)
    n_blocks = n_pad // t
    idx2d = jnp.pad(flat_idx, (0, n_pad - n)).reshape(n_pad, 1)

    table_bytes = num_nodes_pad * dim_pad * table_pad.dtype.itemsize
    vmem_limit = _resident_vmem_limit(table_bytes, t, chunk, dim_pad, vmem_cap)
    # Small grids: single TC avoids a duplicate per-core table DMA on v7x.
    semantics = ("arbitrary",) if n_blocks <= 2 else ("parallel",)

    def run(table_buffer_count):
        if table_buffer_count is None:
            table_spec = pl.BlockSpec((num_nodes_pad, dim_pad), lambda i: (0, 0))
        else:
            # Constant index_map -> fetched once; single buffer halves VMEM.
            table_spec = pl.BlockSpec((num_nodes_pad, dim_pad), lambda i: (0, 0),
                                      pipeline_mode=pl.Buffered(table_buffer_count))
        return pl.pallas_call(
            functools.partial(_resident_gather_kernel, chunk=chunk),
            out_shape=jax.ShapeDtypeStruct((n_pad, dim_pad), table_pad.dtype),
            grid_spec=pltpu.PrefetchScalarGridSpec(
                num_scalar_prefetch=0,
                grid=(n_blocks,),
                in_specs=[pl.BlockSpec((t, 1), lambda i: (i, 0)), table_spec],
                out_specs=pl.BlockSpec((t, dim_pad), lambda i: (i, 0)),
            ),
            compiler_params=pltpu.CompilerParams(
                dimension_semantics=semantics,
                vmem_limit_bytes=vmem_limit),
        )(idx2d, table_pad)

    try:
        return run(1)
    except Exception:          # fall back to default double-buffering
        return run(None)


# ---------------------------------------------------------------------------
# Kernel 2b: large-table path. Scalar-prefetched indices (SMEM) drive a
# data-dependent index_map: one table row is DMA'd per grid step.
# ---------------------------------------------------------------------------
def _row_gather_kernel(idx_ref, row_ref, o_ref):
    del idx_ref                     # consumed by the index_map (SMEM)
    o_ref[...] = row_ref[...]


def _forward_dma(table_pad, flat_idx):
    n = flat_idx.shape[0]
    _, dim_pad = table_pad.shape
    return pl.pallas_call(
        _row_gather_kernel,
        out_shape=jax.ShapeDtypeStruct((n, dim_pad), table_pad.dtype),
        grid_spec=pltpu.PrefetchScalarGridSpec(
            num_scalar_prefetch=1,
            grid=(n,),
            in_specs=[pl.BlockSpec((1, dim_pad),
                                   lambda i, idx_ref: (idx_ref[i], 0))],
            out_specs=pl.BlockSpec((1, dim_pad), lambda i, idx_ref: (i, 0)),
        ),
        compiler_params=pltpu.CompilerParams(
            dimension_semantics=("parallel",)),
    )(flat_idx, table_pad)


# ---------------------------------------------------------------------------
# Forward wrapper
# ---------------------------------------------------------------------------
def embedding_forward(table, edges, *, out_dim=None, node_chunk=None,
                      force_path=None):
    """table: (num_nodes, dim) f32; edges: int array -> edges.shape + (out_dim,).

    Out-of-range indices are undefined behaviour (like torch nn.Embedding).
    """
    table_pad = _pad_table(table)
    num_nodes_pad, dim_pad = table_pad.shape
    out_dim = table.shape[1] if out_dim is None else out_dim

    flat_idx = edges.reshape(-1).astype(jnp.int32)
    n = flat_idx.shape[0]

    vmem_cap = _vmem_capacity_bytes()
    table_bytes = num_nodes_pad * dim_pad * table_pad.dtype.itemsize
    use_resident = table_bytes <= int(0.35 * vmem_cap)   # ~45 MiB v5e/v6e, ~22 MiB v7x
    if force_path == "resident":
        use_resident = True
    elif force_path == "dma":
        use_resident = False

    if use_resident:
        out_pad = _forward_resident(table_pad, flat_idx,
                                    node_chunk=node_chunk, vmem_cap=vmem_cap)
    else:
        out_pad = _forward_dma(table_pad, flat_idx)

    return out_pad[:n, :out_dim].reshape(edges.shape + (out_dim,))


# ---------------------------------------------------------------------------
# Module-equivalent wrapper
# ---------------------------------------------------------------------------
class HyperbolicEmbeddingPallas:
    def __init__(self, num_nodes, dim, key):
        self.num_nodes = num_nodes
        self.dim = dim
        # nn.Embedding weight, uniform_(-0.001, 0.001), then Poincare-normalized.
        w = jax.random.uniform(key, (num_nodes, dim), dtype=jnp.float32,
                               minval=-0.001, maxval=0.001)
        self.weight = poincare_normalize(_pad_table(w))   # padded, normalized

    def __call__(self, edges, **kwargs):
        return embedding_forward(self.weight, edges, out_dim=self.dim, **kwargs)


if __name__ == "__main__":
    key = jax.random.PRNGKey(0)
    k_w, k_e = jax.random.split(key)

    num_nodes, dim = 64, 32
    batch, n_edges = 2, 8

    model = HyperbolicEmbeddingPallas(num_nodes, dim, k_w)
    edges = jax.random.randint(k_e, (batch, n_edges), 0, num_nodes,
                               dtype=jnp.int32)

    # plain-JAX reference of the same semantics
    w = jax.random.uniform(k_w, (num_nodes, dim), dtype=jnp.float32,
                           minval=-0.001, maxval=0.001)
    norm = jnp.linalg.norm(w, axis=-1, keepdims=True)
    scale = jnp.where(norm > 1 - EPS, (1 - EPS) / (norm + EPS),
                      jnp.ones_like(norm))
    ref = (w * scale)[edges]

    out_resident = jax.block_until_ready(model(edges))               # fast path
    out_chunked = jax.block_until_ready(model(edges, node_chunk=16))  # multi-chunk loop
    out_dma = jax.block_until_ready(model(edges, force_path="dma"))   # row-gather path

    assert out_resident.shape == (batch, n_edges, dim)
    for name, o in (("resident", out_resident), ("chunked", out_chunked),
                    ("dma", out_dma)):
        assert o.shape == (batch, n_edges, dim), name
        assert jnp.allclose(o, ref, atol=1e-6), f"mismatch vs reference: {name}"

    print("KERNEL_OK")
</pallas_src>

<mosaic_0001>
module attributes {stable_mosaic.version = 11 : i64} {
  func.func @normalize_kernel(%arg0: i32, %arg1: memref<64x128xf32, #tpu.memory_space<vmem>>, %arg2: memref<64x128xf32, #tpu.memory_space<vmem>>) attributes {dimension_semantics = [#tpu.dimension_semantics<parallel>], iteration_bounds = array<i64: 1>, scalar_prefetch = 0 : i64, scratch_operands = 0 : i64, tpu.core_type = #tpu.core_type<tc>, window_params = [{transform_indices = @transform_0, window_bounds = array<i64: 64, 128>}, {transform_indices = @transform_1, window_bounds = array<i64: 64, 128>}]} {
    %c0 = arith.constant 0 : index
    %c0_0 = arith.constant 0 : index
    %0 = vector.load %arg1[%c0, %c0_0] : memref<64x128xf32, #tpu.memory_space<vmem>>, vector<64x128xf32>
    %1 = arith.mulf %0, %0 : vector<64x128xf32>
    %cst = arith.constant dense<0.000000e+00> : vector<64xf32>
    %2 = vector.multi_reduction <add>, %1, %cst [1] : vector<64x128xf32> to vector<64xf32>
    %3 = vector.shape_cast %2 : vector<64xf32> to vector<64x1xf32>
    %4 = math.sqrt %3 : vector<64x1xf32>
    %cst_1 = arith.constant 0.999989986 : f32
    %5 = vector.broadcast %cst_1 : f32 to vector<64x1xf32>
    %6 = arith.cmpf ogt, %4, %5 : vector<64x1xf32>
    %cst_2 = arith.constant 9.99999974E-6 : f32
    %7 = vector.broadcast %cst_2 : f32 to vector<64x1xf32>
    %8 = arith.addf %4, %7 : vector<64x1xf32>
    %cst_3 = arith.constant 0.999989986 : f32
    %9 = vector.broadcast %cst_3 : f32 to vector<64x1xf32>
    %10 = arith.divf %9, %8 : vector<64x1xf32>
    %cst_4 = arith.constant 1.000000e+00 : f32
    %11 = vector.broadcast %cst_4 : f32 to vector<64x1xf32>
    %12 = arith.select %6, %10, %11 : vector<64x1xi1>, vector<64x1xf32>
    %13 = vector.broadcast %12 : vector<64x1xf32> to vector<64x128xf32>
    %14 = arith.mulf %0, %13 : vector<64x128xf32>
    %c0_5 = arith.constant 0 : index
    %c0_6 = arith.constant 0 : index
    %15 = vector.load %arg2[%c0_5, %c0_6] : memref<64x128xf32, #tpu.memory_space<vmem>>, vector<64x128xf32>
    tpu.vector_store %arg2[%c0_5, %c0_6], %14 {strides = array<i32>} : memref<64x128xf32, #tpu.memory_space<vmem>>, vector<64x128xf32>,
    return
  }
  func.func @transform_0(%arg0: i32) -> (i32, i32) {
    %c0_i32 = arith.constant 0 : i32
    %c0_i32_0 = arith.constant 0 : i32
    return %arg0, %c0_i32 : i32, i32
  }
  func.func @transform_1(%arg0: i32) -> (i32, i32) {
    %c0_i32 = arith.constant 0 : i32
    %c0_i32_0 = arith.constant 0 : i32
    return %arg0, %c0_i32 : i32, i32
  }
}

</mosaic_0001>

<bundles_post_ra>
// kernel: poincare_normalize.1
= control target key start
LH: loop header
LB: loop body
LE: loop exit
PB: predicated region body
PF: predicated region fallthrough
CT: control target
= control target key end

     0   :  { %6 = vsyncpa [#allocation3], 0  ;;  %s376_s0 = inlined_call_operand.hbm [shape: f32[64,128], index: 0, kind: input, shape index: {}, may-alias: {0,1}]   ;;  %s377_s1 = inlined_call_operand.hbm [shape: f32[64,128], index: 1, kind: output, shape index: {}, may-alias: {0,1}]  }
   0x1   :  { %7 = vsyncpa [#allocation4], 0  ;;  %s268_s6 = smov [#allocation2]   ;;  %s220_s10 = scalar_lea.hbm %s376_s0, 1024 }
   0x2   :  { %s13_s7 = sshll.u32 %s268_s6, 4  ;;  %p221_p0 = scmp.ne.s32.totalorder %s376_s0, %s220_s10  ;;  %s14_s7 = int_to_ptr.vmem [resolvable:$true] %s13_s7 }
   0x3   :  { %p224_p1 = scmp.lt.u32.totalorder %s220_s10, %s376_s0 }
   0x5   :  { %p226_p2 = pnand %p224_p1, %p221_p0 }
   0x7   :  { %229 = shalt.err (!%p226_p2)
}
   0x8   :  { %s230_s15 = scalar_lea.vmem %s14_s7, 1024  ;;  %p235_p4 = scmp.lt.s32.totalorder %s14_s7, %s14_s7 }
   0x9   :  { %p231_p3 = scmp.ne.s32.totalorder %s14_s7, %s230_s15  ;;  %p236_p5 = scmp.lt.s32.totalorder %s230_s15, %s230_s15 }
   0xb   :  { %p237_p6 = por %p236_p5, %p235_p4 }
   0xd   :  { %p238_p7 = pnand %p237_p6, %p231_p3 }
   0xf   :  { %241 = shalt.err (!%p238_p7)
}
  0x10   :  { %s269_s16 = smov 128   ;;  %s270_s17 = smov 8  }
  0x11   :  { %19 = dma.hbm_to_vmem [thread:$0]  %s376_s0, 1024, %s14_s7, [#allocation3], %s269_s16, %s269_s16, %s270_s17  }
  0x12   :  { %264 = dma.done.wait [#allocation3], 1024  }
  0x13   :  { %265 = vsyncadd [#allocation3], 4294966272  ;;  %v297_v0 = vld [vmem:[#allocation2 + $0x10] sm:$0xff]  ;;  %v299_v1 = vld [vmem:[#allocation2] sm:$0xff]  ;;  %s271_s0 = smov [#allocation5]  }
  0x14   :  { %v301_v2 = vld [vmem:[#allocation2 + $0x18] sm:$0xff]  ;;  %v33_v3 = vmul.f32 %v297_v0, %v297_v0  ;;  %v31_v4 = vmul.f32 %v299_v1, %v299_v1  ;;  %v307_v5 = vld [vmem:[#allocation2 + $0x8] sm:$0xff]  ;;  %v315_v9 = vld [vmem:[#allocation2 + $0x20] sm:$0xff]  ;;  %s172_s20 = sshll.u32 %s271_s0, 4  ;;  %s173_s20 = int_to_ptr.vmem [resolvable:$true] %s172_s20 }
  0x15   :  { %v34_v6 = vmul.f32 %v301_v2, %v301_v2  ;;  %v32_v7 = vmul.f32 %v307_v5, %v307_v5  ;;  %v313_v8 = vld [vmem:[#allocation2 + $0x28] sm:$0xff]  ;;  %v35_v11 = vmul.f32 %v315_v9, %v315_v9  ;;  %v321_v12 = vld [vmem:[#allocation2 + $0x38] sm:$0xff]  ;;  %v323_v13 = vld [vmem:[#allocation2 + $0x30] sm:$0xff]  ;;  %s242_s21 = scalar_lea.vmem %s173_s20, 1024  ;;  %p247_p9 = scmp.lt.s32.totalorder %s173_s20, %s173_s20 }
  0x16   :  { %43 = vadd.xlane.f32.xlu1 %v33_v3  ;;  %39 = vadd.xlane.f32.xlu0 %v31_v4  ;;  %v36_v10 = vmul.f32 %v313_v8, %v313_v8  ;;  %v38_v14 = vmul.f32 %v321_v12, %v321_v12  ;;  %v37_v15 = vmul.f32 %v323_v13, %v323_v13  ;;  %p243_p8 = scmp.ne.s32.totalorder %s173_s20, %s242_s21  ;;  %p248_p10 = scmp.lt.s32.totalorder %s242_s21, %s242_s21 }
  0x18   :  { %p249_p11 = por %p248_p10, %p247_p9 }
  0x1a   :  { %45 = vadd.xlane.f32.xlu1 %v34_v6  ;;  %41 = vadd.xlane.f32.xlu0 %v32_v7  ;;  %p250_p12 = pnand %p249_p11, %p243_p8 }
  0x1e   :  { %49 = vadd.xlane.f32.xlu1 %v36_v10  ;;  %47 = vadd.xlane.f32.xlu0 %v35_v11 }
  0x22   :  { %53 = vadd.xlane.f32.xlu1 %v38_v14  ;;  %51 = vadd.xlane.f32.xlu0 %v37_v15 }
  0xa3   :  { %v44_v16 = vpop.xlane.xlu1 %43  ;;  %v40_v17 = vpop.xlane.xlu0 %39 }
  0xa4   :  { %188 = vrsqrt.f32 %v44_v16  ;;  %vm71_vm0 = vcmp.eq.f32.partialorder %v44_v16, inf  ;;  %vm73_vm1 = vcmp.eq.f32.partialorder %v44_v16, 0.0  ;;  %v74_v27 = vand.u32 2147483648, %v44_v16 }
  0xa5   :  { %190 = vrsqrt.f32 %v40_v17  ;;  %vm57_vm2 = vcmp.eq.f32.partialorder %v40_v17, inf  ;;  %v60_v30 = vand.u32 2147483648, %v40_v17  ;;  %vm59_vm3 = vcmp.eq.f32.partialorder %v40_v17, 0.0 }
  0xa7   :  { %v46_v18 = vpop.xlane.xlu1 %45  ;;  %v42_v19 = vpop.xlane.xlu0 %41 }
  0xa8   :  { %192 = vrsqrt.f32 %v46_v18  ;;  %vm78_vm4 = vcmp.eq.f32.partialorder %v46_v18, inf  ;;  %vm80_vm5 = vcmp.eq.f32.partialorder %v46_v18, 0.0  ;;  %v81_v39 = vand.u32 2147483648, %v46_v18 }
  0xa9   :  { %194 = vrsqrt.f32 %v42_v19  ;;  %vm64_vm6 = vcmp.eq.f32.partialorder %v42_v19, inf  ;;  %v67_v42 = vand.u32 2147483648, %v42_v19  ;;  %vm66_vm7 = vcmp.eq.f32.partialorder %v42_v19, 0.0 }
  0xab   :  { %v50_v20 = vpop.xlane.xlu1 %49  ;;  %v48_v21 = vpop.xlane.xlu0 %47 }
  0xac   :  { %196 = vrsqrt.f32 %v50_v20  ;;  %vm92_vm8 = vcmp.eq.f32.partialorder %v50_v20, inf  ;;  %vm94_vm9 = vcmp.eq.f32.partialorder %v50_v20, 0.0  ;;  %v95_v51 = vand.u32 2147483648, %v50_v20 }
  0xad   :  { %198 = vrsqrt.f32 %v48_v21  ;;  %vm85_vm10 = vcmp.eq.f32.partialorder %v48_v21, inf  ;;  %v88_v54 = vand.u32 2147483648, %v48_v21  ;;  %vm87_vm11 = vcmp.eq.f32.partialorder %v48_v21, 0.0 }
  0xae   :  { %v189_v22 = vpop.eup %188 }
  0xaf   :  { %v191_v23 = vpop.eup %190  ;;  %v70_v24 = vmul.f32 %v189_v22, %v44_v16  ;;  %v329_v25 = vpop.xlane.xlu1 %53 }
  0xb0   :  { %v331_v26 = vpop.xlane.xlu0 %51  ;;  %v56_v28 = vmul.f32 %v191_v23, %v40_v17  ;;  %200 = vrsqrt.f32 %v329_v25  ;;  %vm106_vm12 = vcmp.eq.f32.partialorder %v329_v25, inf  ;;  %vm108_vm13 = vcmp.eq.f32.partialorder %v329_v25, 0.0 }
  0xb1   :  { %v72_v29 = vsel %vm71_vm0, %v44_v16, %v70_v24  ;;  %202 = vrsqrt.f32 %v331_v26  ;;  %v109_v63 = vand.u32 2147483648, %v329_v25  ;;  %vm99_vm14 = vcmp.eq.f32.partialorder %v331_v26, inf }
  0xb2   :  { %v193_v31 = vpop.eup %192  ;;  %v335_v32 = vsel %vm73_vm1, %v74_v27, %v72_v29  ;;  %v58_v33 = vsel %vm57_vm2, %v40_v17, %v56_v28  ;;  %v102_v6 = vand.u32 2147483648, %v331_v26  ;;  %vm101_vm15 = vcmp.eq.f32.partialorder %v331_v26, 0.0 }
  0xb3   :  { %v195_v34 = vpop.eup %194  ;;  %v121_v35 = vadd.f32 1e-05, %v335_v32  ;;  %v338_v36 = vsel %vm59_vm3, %v60_v30, %v58_v33  ;;  %v77_v37 = vmul.f32 %v193_v31, %v46_v18  ;;  %vm113_vm0 = vcmp.gt.f32.partialorder %v335_v32, 0.99999 }
  0xb4   :  { %v119_v38 = vadd.f32 1e-05, %v338_v36  ;;  %v63_v40 = vmul.f32 %v195_v34, %v42_v19  ;;  %vm111_vm1 = vcmp.gt.f32.partialorder %v338_v36, 0.99999 }
  0xb5   :  { %204 = vrcp.f32 %v121_v35  ;;  %v79_v41 = vsel %vm78_vm4, %v46_v18, %v77_v37 }
  0xb6   :  { %v197_v43 = vpop.eup %196  ;;  %206 = vrcp.f32 %v119_v38  ;;  %v82_v44 = vsel %vm80_vm5, %v81_v39, %v79_v41  ;;  %v65_v45 = vsel %vm64_vm6, %v42_v19, %v63_v40 }
  0xb7   :  { %v199_v46 = vpop.eup %198  ;;  %v122_v47 = vadd.f32 1e-05, %v82_v44  ;;  %v68_v48 = vsel %vm66_vm7, %v67_v42, %v65_v45  ;;  %v91_v49 = vmul.f32 %v197_v43, %v50_v20  ;;  %vm114_vm2 = vcmp.gt.f32.partialorder %v82_v44, 0.99999 }
  0xb8   :  { %v120_v50 = vadd.f32 1e-05, %v68_v48  ;;  %v84_v52 = vmul.f32 %v199_v46, %v48_v21  ;;  %vm112_vm3 = vcmp.gt.f32.partialorder %v68_v48, 0.99999 }
  0xb9   :  { %208 = vrcp.f32 %v122_v47  ;;  %v93_v53 = vsel %vm92_vm8, %v50_v20, %v91_v49 }
  0xba   :  { %v201_v55 = vpop.eup %200  ;;  %210 = vrcp.f32 %v120_v50  ;;  %v96_v56 = vsel %vm94_vm9, %v95_v51, %v93_v53  ;;  %v86_v57 = vsel %vm85_vm10, %v48_v21, %v84_v52 }
  0xbb   :  { %v203_v58 = vpop.eup %202  ;;  %v124_v59 = vadd.f32 1e-05, %v96_v56  ;;  %v89_v60 = vsel %vm87_vm11, %v88_v54, %v86_v57  ;;  %v105_v61 = vmul.f32 %v201_v55, %v329_v25  ;;  %vm116_vm4 = vcmp.gt.f32.partialorder %v96_v56, 0.99999 }
  0xbc   :  { %v123_v62 = vadd.f32 1e-05, %v89_v60  ;;  %v98_v3 = vmul.f32 %v203_v58, %v331_v26  ;;  %vm115_vm5 = vcmp.gt.f32.partialorder %v89_v60, 0.99999 }
  0xbd   :  { %212 = vrcp.f32 %v124_v59  ;;  %v107_v4 = vsel %vm106_vm12, %v329_v25, %v105_v61 }
  0xbe   :  { %214 = vrcp.f32 %v123_v62  ;;  %v110_v7 = vsel %vm108_vm13, %v109_v63, %v107_v4  ;;  %v100_v10 = vsel %vm99_vm14, %v331_v26, %v98_v3 }
  0xbf   :  { %v205_v11 = vpop.eup %204  ;;  %v126_v14 = vadd.f32 1e-05, %v110_v7  ;;  %v103_v15 = vsel %vm101_vm15, %v102_v6, %v100_v10  ;;  %vm118_vm6 = vcmp.gt.f32.partialorder %v110_v7, 0.99999 }
  0xc0   :  { %v207_v16 = vpop.eup %206  ;;  %v132_v17 = vmul.f32 0.99999, %v205_v11  ;;  %v125_v18 = vadd.f32 1e-05, %v103_v15  ;;  %vm117_vm7 = vcmp.gt.f32.partialorder %v103_v15, 0.99999 }
  0xc1   :  { %v128_v19 = vmul.f32 0.99999, %v207_v16  ;;  %216 = vrcp.f32 %v126_v14 }
  0xc2   :  { %v145_v20 = vsel %vm113_vm0, %v132_v17, 1.0  ;;  %218 = vrcp.f32 %v125_v18 }
  0xc3   :  { %v209_v21 = vpop.eup %208  ;;  %v153_v22 = vmul.f32 %v145_v20, %v297_v0  ;;  %v143_v23 = vsel %vm111_vm1, %v128_v19, 1.0 }
  0xc4   :  { %v211_v24 = vpop.eup %210  ;;  %v151_v25 = vmul.f32 %v143_v23, %v299_v1  ;;  %v134_v26 = vmul.f32 0.99999, %v209_v21 }
  0xc5   :  { %161 = vst [vmem:[#allocation5 + $0x10] sm:$0xff] %v153_v22  ;;  %v130_v27 = vmul.f32 0.99999, %v211_v24 }
  0xc6   :  { %159 = vst [vmem:[#allocation5] sm:$0xff] %v151_v25  ;;  %v146_v28 = vsel %vm114_vm2, %v134_v26, 1.0 }
  0xc7   :  { %v213_v29 = vpop.eup %212  ;;  %v154_v30 = vmul.f32 %v146_v28, %v301_v2  ;;  %v144_v31 = vsel %vm112_vm3, %v130_v27, 1.0 }
  0xc8   :  { %v215_v32 = vpop.eup %214  ;;  %v152_v33 = vmul.f32 %v144_v31, %v307_v5  ;;  %v138_v34 = vmul.f32 0.99999, %v213_v29 }
  0xc9   :  { %162 = vst [vmem:[#allocation5 + $0x18] sm:$0xff] %v154_v30  ;;  %v136_v0 = vmul.f32 0.99999, %v215_v32 }
  0xca   :  { %160 = vst [vmem:[#allocation5 + $0x8] sm:$0xff] %v152_v33  ;;  %v148_v1 = vsel %vm116_vm4, %v138_v34, 1.0 }
  0xcb   :  { %v217_v35 = vpop.eup %216  ;;  %v156_v36 = vmul.f32 %v148_v1, %v313_v8  ;;  %v147_v37 = vsel %vm115_vm5, %v136_v0, 1.0 }
  0xcc   :  { %v219_v38 = vpop.eup %218  ;;  %v155_v39 = vmul.f32 %v147_v37, %v315_v9  ;;  %v142_v40 = vmul.f32 0.99999, %v217_v35 }
  0xcd   :  { %164 = vst [vmem:[#allocation5 + $0x28] sm:$0xff] %v156_v36  ;;  %v140_v2 = vmul.f32 0.99999, %v219_v38 }
  0xce   :  { %163 = vst [vmem:[#allocation5 + $0x20] sm:$0xff] %v155_v39  ;;  %v150_v5 = vsel %vm118_vm6, %v142_v40, 1.0 }
  0xcf   :  { %v158_v41 = vmul.f32 %v150_v5, %v321_v12  ;;  %v149_v42 = vsel %vm117_vm7, %v140_v2, 1.0 }
  0xd0   :  { %v157_v43 = vmul.f32 %v149_v42, %v323_v13 }
  0xd1   :  { %166 = vst [vmem:[#allocation5 + $0x38] sm:$0xff] %v158_v41 }
  0xd2   :  { %165 = vst [vmem:[#allocation5 + $0x30] sm:$0xff] %v157_v43 }
  0xd3   :  { %253 = shalt.err (!%p250_p12)
}
  0xd4   :  { %s254_s24 = scalar_lea.hbm %s377_s1, 1024 }
  0xd5   :  { %p255_p13 = scmp.ne.s32.totalorder %s377_s1, %s254_s24  ;;  %p258_p0 = scmp.lt.u32.totalorder %s254_s24, %s377_s1 }
  0xd7   :  { %p260_p1 = pnand %p258_p0, %p255_p13 }
  0xd9   :  { %263 = shalt.err (!%p260_p1)
}
  0xda   :  { %178 = dma.vmem_to_hbm [thread:$0]  %s173_s20, 1024, %s377_s1, [#allocation4], %s269_s16, %s269_s16, %s270_s17  }
  0xdb   :  { %266 = dma.done.wait [#allocation4], 1024  }
  0xdc   :  { %267 = vsyncadd [#allocation4], 4294966272 }
  0xdd   :  { %182 = vsyncpa [#allocation3], 1 }
  0xde   :  { %183 = vsyncpa [#allocation4], 1 }

</bundles_post_ra>
